<compile_context>
chip_gen: v7x
topology: tpu7x:2x2x1
jax: 0.10.0
libtpu: 0.0.40
codegen_flags: <defaults>
</compile_context>

<pallas_src>
import numpy as np
import jax
import jax.numpy as jnp
from jax.experimental import pallas as pl
from jax.experimental.pallas import tpu as pltpu

N_S = 4   # state dim  (PPO(4, 1))
N_A = 1   # action dim

# ---- packed-parameter slab layout (transposed weights, batch-on-lanes) ------
_SLAB_ROWS, _SLAB_COLS = 80, 48
_COL_W1_RAW = 0    # cols 0:4  rows 0:48  W1^T acting on the raw state
_COL_W1_NORM = 4   # cols 4:8  rows 0:48  W1^T acting on the normalized state
_COL_B1 = 8        # col  8    rows 0:48  fused layer-1 bias
_COL_B2 = 9        # col  9    rows 0:24  fused layer-2 bias
_COL_B3 = 10       # col 10    rows 0:8   fused layer-3 bias (ir, mu)
_ROW_W2 = 48       # rows 48:72 cols 0:48 fused layer-2 W^T (24 live outputs)
_ROW_W3 = 72       # rows 72:80 cols 0:24 fused layer-3 W^T (row0=ir, row1=mu)


def _round_up(x, m):
    return ((x + m - 1) // m) * m


def _cdiv(a, b):
    return -(-a // b)


# ----------------------------------------------------------------------------
# Pallas kernel + wrapper
# ----------------------------------------------------------------------------
def nn_ab_pallas(state, mean, std, param_slab, noise, *, max_block_b=8192):
    """Fused NN_ab forward.

    Returns (intrinsic_reward (B,1), mu (B,1), action (B,1) int32)."""
    B = state.shape[0]
    b_pad = _round_up(max(B, 1), 128)
    if b_pad <= 128:
        tb = b_pad
    else:
        # >= 2 blocks so both v7x TensorCores get work; block <= max_block_b.
        n_blk = max(2, _cdiv(b_pad, max_block_b))
        tb = _round_up(_cdiv(b_pad, n_blk), 128)
        b_pad = _round_up(b_pad, tb)

    # Host-side layout plumbing: pack [state; mean; std; noise] batch-on-lanes.
    data = jnp.zeros((16, b_pad), jnp.float32)
    data = data.at[0:4, :B].set(state.astype(jnp.float32).T)
    data = data.at[4:8, :B].set(mean.astype(jnp.float32).T)
    data = data.at[8:12, :B].set(std.astype(jnp.float32).T)
    data = data.at[12, :B].set(noise.astype(jnp.float32))

    n_rows, n_cols = param_slab.shape

    def kernel(data_ref, slab_ref, out_ref):
        blk = data_ref[...]                                  # (16, tb)
        s_raw = blk[0:4, :]
        s_mean = blk[4:8, :]
        s_std = blk[8:12, :]
        u = blk[12:13, :]                                    # uniform [0,1)

        # Nomalize: (x - mean) / (std + 1e-8), clipped to [-5, 5].
        s_norm = jnp.clip((s_raw - s_mean) / (s_std + 1e-8), -5.0, 5.0)

        # layer 1: fused intrinsic fc1 (raw state) + actor fc1 (normalized);
        # two accumulating matmuls instead of a lane concatenate.
        w1r = slab_ref[0:48, _COL_W1_RAW:_COL_W1_RAW + 4]    # (48, 4)
        w1n = slab_ref[0:48, _COL_W1_NORM:_COL_W1_NORM + 4]  # (48, 4)
        b1 = slab_ref[0:48, _COL_B1:_COL_B1 + 1]             # (48, 1)
        a1 = jnp.tanh(
            jnp.dot(w1r, s_raw, preferred_element_type=jnp.float32)
            + jnp.dot(w1n, s_norm, preferred_element_type=jnp.float32)
            + b1)                                            # (48, tb)

        # layer 2: only the 24 live output rows (8 intrinsic + 16 actor).
        w2 = slab_ref[_ROW_W2:_ROW_W2 + 24, 0:48]            # (24, 48)
        b2 = slab_ref[0:24, _COL_B2:_COL_B2 + 1]             # (24, 1)
        a2 = jnp.tanh(
            jnp.dot(w2, a1, preferred_element_type=jnp.float32) + b2)

        # layer 3: row 0 = intrinsic reward head, row 1 = mu head (the actor
        # random_vetor is folded into the mu weights host-side).
        w3 = slab_ref[_ROW_W3:_ROW_W3 + 8, 0:24]             # (8, 24)
        b3 = slab_ref[0:8, _COL_B3:_COL_B3 + 1]              # (8, 1)
        out3 = jnp.dot(w3, a2, preferred_element_type=jnp.float32) + b3

        ir = out3[0:1, :]                                    # intrinsic reward
        mu = 1.0 / (1.0 + jnp.exp(-out3[1:2, :]))            # sigmoid
        action = (u < mu).astype(jnp.float32)                # Bernoulli sample

        # Direct lane-dense row stores (no concatenate / zeros packing).
        out_ref[0:1, :] = ir
        out_ref[1:2, :] = mu
        out_ref[2:3, :] = action
        out_ref[3:8, :] = jnp.zeros_like(out3[3:8, :])

    out = pl.pallas_call(
        kernel,
        out_shape=jax.ShapeDtypeStruct((8, b_pad), jnp.float32),
        grid_spec=pltpu.PrefetchScalarGridSpec(
            num_scalar_prefetch=0,
            grid=(b_pad // tb,),
            in_specs=[
                pl.BlockSpec((16, tb), lambda i: (0, i)),
                # constant index_map -> param slab stays VMEM-resident
                pl.BlockSpec((n_rows, n_cols), lambda i: (0, 0)),
            ],
            out_specs=pl.BlockSpec((8, tb), lambda i: (0, i)),
        ),
        compiler_params=pltpu.CompilerParams(
            dimension_semantics=("parallel",)),
    )(data, param_slab)

    ir = out[0, :B][:, None]
    mu = out[1, :B][:, None]
    action = out[2, :B][:, None].astype(jnp.int32)
    return ir, mu, action


# ----------------------------------------------------------------------------
# Host-side glue: parameter init, parameter packing, Nomalize running stats.
# ----------------------------------------------------------------------------
def init_params(key):
    ks = jax.random.split(key, 14)

    def lin(kw, kb, fan_in, fan_out):
        # deterministic stand-in for torch's Linear init; weights stored (in, out)
        w = jax.random.normal(kw, (fan_in, fan_out), jnp.float32) * 0.1
        b = jax.random.normal(kb, (1, fan_out), jnp.float32) * 0.1
        return w, b

    w1i, b1i = lin(ks[0], ks[1], 4, 16)      # Intrinsic_Reward.fc1
    w2i, b2i = lin(ks[2], ks[3], 16, 8)      # Intrinsic_Reward.fc2
    w3i, b3i = lin(ks[4], ks[5], 8, 1)       # Intrinsic_Reward.fc_loc
    w1a, b1a = lin(ks[6], ks[7], N_S, 32)    # Actor.fc1
    w2a, b2a = lin(ks[8], ks[9], 32, 16)     # Actor.fc2
    wmu, bmu = lin(ks[10], ks[11], 16, N_A)  # Actor.mu

    # Actor's one-time random_vetor: rand(16)*4-2, kept only where rand < 0.5
    rv = jax.random.uniform(ks[12], (1, 16), jnp.float32) * 4.0 - 2.0
    gate = jax.random.uniform(ks[13], (1, 16), jnp.float32)
    rv = jnp.where(gate < 0.5, rv, jnp.ones_like(rv))

    return dict(w1i=w1i, b1i=b1i, w2i=w2i, b2i=b2i, w3i=w3i, b3i=b3i,
                w1a=w1a, b1a=b1a, w2a=w2a, b2a=b2a, rv=rv, wmu=wmu, bmu=bmu)


def pack_params(params):
    """Pack every NN_ab parameter into one (80, 48) f32 slab.

    Weights are stored transposed (out, in) and arranged block-diagonally so
    the intrinsic-reward net and the actor net share one (features, batch)
    matmul per layer; the actor random_vetor is folded into the mu-head row."""
    p = {k: np.asarray(v, np.float32) for k, v in params.items()}
    slab = np.zeros((_SLAB_ROWS, _SLAB_COLS), np.float32)

    # layer 1: [h1_intrinsic(16); a1_actor(32)] = W1r @ s_raw + W1n @ s_norm + b1
    slab[0:16, _COL_W1_RAW:_COL_W1_RAW + 4] = p["w1i"].T
    slab[16:48, _COL_W1_NORM:_COL_W1_NORM + 4] = p["w1a"].T
    slab[0:16, _COL_B1] = p["b1i"][0]
    slab[16:48, _COL_B1] = p["b1a"][0]

    # layer 2 (live rows only): [h2_intrinsic(8); a2_actor(16)]
    slab[_ROW_W2 + 0:_ROW_W2 + 8, 0:16] = p["w2i"].T
    slab[_ROW_W2 + 8:_ROW_W2 + 24, 16:48] = p["w2a"].T
    slab[0:8, _COL_B2] = p["b2i"][0]
    slab[8:24, _COL_B2] = p["b2a"][0]

    # layer 3: row 0 = intrinsic reward head, row 1 = actor mu head
    # ((x*rv) @ Wmu == x @ (rv[:,None]*Wmu), so fold rv into the mu weights).
    slab[_ROW_W3 + 0, 0:8] = p["w3i"][:, 0]
    wmu_eff = p["rv"].reshape(16, 1) * p["wmu"]
    slab[_ROW_W3 + 1, 8:24] = wmu_eff[:, 0]
    slab[0, _COL_B3] = p["b3i"][0, 0]
    slab[1, _COL_B3] = p["bmu"][0, 0]

    return jnp.asarray(slab)


def nn_ab_reference(state, mean, std, p):
    """Unfused pure-jnp reference of the NN_ab forward (ir + mu)."""
    h1 = jnp.tanh(state @ p["w1i"] + p["b1i"])
    h2 = jnp.tanh(h1 @ p["w2i"] + p["b2i"])
    ir = h2 @ p["w3i"] + p["b3i"]
    s = jnp.clip((state - mean) / (std + 1e-8), -5.0, 5.0)
    a1 = jnp.tanh(s @ p["w1a"] + p["b1a"])
    a2 = jnp.tanh(a1 @ p["w2a"] + p["b2a"]) * p["rv"]
    mu = jax.nn.sigmoid(a2 @ p["wmu"] + p["bmu"])
    return ir, mu


class NomalizeStats:
    """Exact replica of the Nomalize running-stat recurrence (host-side /
    sequential, as in the original numpy code).  Returns the (mean, std)
    applied to each incoming state; the normalization itself runs inside the
    Pallas kernel."""

    def __init__(self, n_s):
        self.mean = np.zeros((n_s,), np.float32)
        self.std = np.zeros((n_s,), np.float32)
        self.stdd = np.zeros((n_s,), np.float32)
        self.n = 0

    def update(self, x):
        x = np.asarray(x, np.float32)
        self.n += 1
        if self.n == 1:
            self.mean = x
        else:
            old_mean = self.mean.copy()
            self.mean = old_mean + ((x - old_mean) / self.n).astype(np.float32)
            self.stdd = self.stdd + (x - old_mean) * (x - self.mean)
        if self.n > 1:
            self.std = np.sqrt(self.stdd / (self.n - 1))
        else:
            self.std = self.mean
        return self.mean.copy(), self.std.copy()


if __name__ == "__main__":
    key = jax.random.PRNGKey(0)
    k_params, k_state, k_noise = jax.random.split(key, 3)

    params = init_params(k_params)
    slab = pack_params(params)

    # A small batch of environment states, shape (B, 4); each row is one call
    # to NN_ab.forward.
    B = 8
    states = jax.random.normal(k_state, (B, N_S), jnp.float32)

    # Sequential Nomalize running stats (stateful host glue, like the original).
    nomalizer = NomalizeStats(N_S)
    means, stds = [], []
    for row in np.asarray(states):
        m, s = nomalizer.update(row)
        means.append(m)
        stds.append(s)
    means = jnp.asarray(np.stack(means), jnp.float32)   # (B, 4)
    stds = jnp.asarray(np.stack(stds), jnp.float32)     # (B, 4)

    # Uniform noise for the Bernoulli(mu) action draw (Actor.choose_action).
    noise = jax.random.uniform(k_noise, (B,), jnp.float32)

    intrinsic_reward, mu, action = nn_ab_pallas(states, means, stds, slab,
                                                noise)
    jax.block_until_ready((intrinsic_reward, mu, action))

    # Correctness check of the fused kernel vs. an unfused jnp reference.
    ir_ref, mu_ref = nn_ab_reference(states, means, stds, params)
    np.testing.assert_allclose(np.asarray(intrinsic_reward), np.asarray(ir_ref),
                               atol=5e-3, rtol=5e-3)
    np.testing.assert_allclose(np.asarray(mu), np.asarray(mu_ref),
                               atol=5e-3, rtol=5e-3)
    assert intrinsic_reward.shape == (B, 1)
    assert mu.shape == (B, 1)
    assert action.shape == (B, 1)
    assert bool(jnp.all((action == 0) | (action == 1)))
    # The Bernoulli sample is deterministic given the noise and the kernel's mu.
    act_expected = (np.asarray(noise)[:, None] < np.asarray(mu)).astype(np.int32)
    np.testing.assert_array_equal(np.asarray(action), act_expected)

    # TODO(synk): PPO.train / get_gae / Adam optimizer state, the replay memory
    # and the sequential Nomalize running-stat *update* are training-time,
    # stateful host logic and are not part of the kernel forward path.

    print("KERNEL_OK")
</pallas_src>

<mosaic_0001>
module attributes {stable_mosaic.version = 11 : i64} {
  func.func @kernel(%arg0: i32, %arg1: memref<16x128xf32, #tpu.memory_space<vmem>>, %arg2: memref<80x48xf32, #tpu.memory_space<vmem>>, %arg3: memref<8x128xf32, #tpu.memory_space<vmem>>) attributes {dimension_semantics = [#tpu.dimension_semantics<parallel>], iteration_bounds = array<i64: 1>, scalar_prefetch = 0 : i64, scratch_operands = 0 : i64, tpu.core_type = #tpu.core_type<tc>, window_params = [{transform_indices = @transform_0, window_bounds = array<i64: 16, 128>}, {pipeline_mode = #tpu.pipeline_mode<synchronous>, transform_indices = @transform_1, window_bounds = array<i64: 80, 48>}, {transform_indices = @transform_2, window_bounds = array<i64: 8, 128>}]} {
    %c0 = arith.constant 0 : index
    %c0_0 = arith.constant 0 : index
    %0 = vector.load %arg1[%c0, %c0_0] : memref<16x128xf32, #tpu.memory_space<vmem>>, vector<16x128xf32>
    %1 = vector.extract_strided_slice %0 {offsets = [0, 0], sizes = [4, 128], strides = [1, 1]} : vector<16x128xf32> to vector<4x128xf32>
    %2 = vector.extract_strided_slice %0 {offsets = [4, 0], sizes = [4, 128], strides = [1, 1]} : vector<16x128xf32> to vector<4x128xf32>
    %3 = vector.extract_strided_slice %0 {offsets = [8, 0], sizes = [4, 128], strides = [1, 1]} : vector<16x128xf32> to vector<4x128xf32>
    %4 = vector.extract_strided_slice %0 {offsets = [12, 0], sizes = [1, 128], strides = [1, 1]} : vector<16x128xf32> to vector<1x128xf32>
    %5 = arith.subf %1, %2 : vector<4x128xf32>
    %cst = arith.constant 9.99999993E-9 : f32
    %6 = vector.broadcast %cst : f32 to vector<4x128xf32>
    %7 = arith.addf %3, %6 : vector<4x128xf32>
    %8 = arith.divf %5, %7 : vector<4x128xf32>
    %cst_1 = arith.constant -5.000000e+00 : f32
    %cst_2 = arith.constant 5.000000e+00 : f32
    %9 = vector.broadcast %cst_1 : f32 to vector<4x128xf32>
    %10 = arith.maximumf %9, %8 : vector<4x128xf32>
    %11 = vector.broadcast %cst_2 : f32 to vector<4x128xf32>
    %12 = arith.minimumf %11, %10 : vector<4x128xf32>
    %c0_3 = arith.constant 0 : index
    %c0_4 = arith.constant 0 : index
    %13 = vector.load %arg2[%c0_3, %c0_4] : memref<80x48xf32, #tpu.memory_space<vmem>>, vector<48x4xf32>
    %c0_5 = arith.constant 0 : index
    %c4 = arith.constant 4 : index
    %14 = vector.load %arg2[%c0_5, %c4] : memref<80x48xf32, #tpu.memory_space<vmem>>, vector<48x4xf32>
    %c0_6 = arith.constant 0 : index
    %c8 = arith.constant 8 : index
    %15 = vector.load %arg2[%c0_6, %c8] : memref<80x48xf32, #tpu.memory_space<vmem>>, vector<48x1xf32>
    %cst_7 = arith.constant dense<0.000000e+00> : vector<48x128xf32>
    %16 = tpu.matmul %13, %1, %cst_7 {dimension_numbers = #tpu.dot_dimension_numbers<[1], [0], [0], [1], [0, 0, 1, 1], [], []>} : vector<48x4xf32>, vector<4x128xf32>, vector<48x128xf32> -> vector<48x128xf32>
    %cst_8 = arith.constant dense<0.000000e+00> : vector<48x128xf32>
    %17 = tpu.matmul %14, %12, %cst_8 {dimension_numbers = #tpu.dot_dimension_numbers<[1], [0], [0], [1], [0, 0, 1, 1], [], []>} : vector<48x4xf32>, vector<4x128xf32>, vector<48x128xf32> -> vector<48x128xf32>
    %18 = arith.addf %16, %17 : vector<48x128xf32>
    %19 = vector.broadcast %15 : vector<48x1xf32> to vector<48x128xf32>
    %20 = arith.addf %18, %19 : vector<48x128xf32>
    %21 = math.tanh %20 : vector<48x128xf32>
    %c48 = arith.constant 48 : index
    %c0_9 = arith.constant 0 : index
    %22 = vector.load %arg2[%c48, %c0_9] : memref<80x48xf32, #tpu.memory_space<vmem>>, vector<24x48xf32>
    %c0_10 = arith.constant 0 : index
    %c9 = arith.constant 9 : index
    %23 = vector.load %arg2[%c0_10, %c9] : memref<80x48xf32, #tpu.memory_space<vmem>>, vector<24x1xf32>
    %cst_11 = arith.constant dense<0.000000e+00> : vector<24x128xf32>
    %24 = tpu.matmul %22, %21, %cst_11 {dimension_numbers = #tpu.dot_dimension_numbers<[1], [0], [0], [1], [0, 0, 1, 1], [], []>} : vector<24x48xf32>, vector<48x128xf32>, vector<24x128xf32> -> vector<24x128xf32>
    %25 = vector.broadcast %23 : vector<24x1xf32> to vector<24x128xf32>
    %26 = arith.addf %24, %25 : vector<24x128xf32>
    %27 = math.tanh %26 : vector<24x128xf32>
    %c72 = arith.constant 72 : index
    %c0_12 = arith.constant 0 : index
    %28 = vector.load %arg2[%c72, %c0_12] : memref<80x48xf32, #tpu.memory_space<vmem>>, vector<8x24xf32>
    %c0_13 = arith.constant 0 : index
    %c10 = arith.constant 10 : index
    %29 = vector.load %arg2[%c0_13, %c10] : memref<80x48xf32, #tpu.memory_space<vmem>>, vector<8x1xf32>
    %cst_14 = arith.constant dense<0.000000e+00> : vector<8x128xf32>
    %30 = tpu.matmul %28, %27, %cst_14 {dimension_numbers = #tpu.dot_dimension_numbers<[1], [0], [0], [1], [0, 0, 1, 1], [], []>} : vector<8x24xf32>, vector<24x128xf32>, vector<8x128xf32> -> vector<8x128xf32>
    %31 = vector.broadcast %29 : vector<8x1xf32> to vector<8x128xf32>
    %32 = arith.addf %30, %31 : vector<8x128xf32>
    %33 = vector.extract_strided_slice %32 {offsets = [0, 0], sizes = [1, 128], strides = [1, 1]} : vector<8x128xf32> to vector<1x128xf32>
    %34 = vector.extract_strided_slice %32 {offsets = [1, 0], sizes = [1, 128], strides = [1, 1]} : vector<8x128xf32> to vector<1x128xf32>
    %cst_15 = arith.constant 0.000000e+00 : f32
    %35 = vector.broadcast %cst_15 : f32 to vector<1x128xf32>
    %36 = arith.subf %35, %34 : vector<1x128xf32>
    %37 = math.exp %36 : vector<1x128xf32>
    %cst_16 = arith.constant 1.000000e+00 : f32
    %38 = vector.broadcast %cst_16 : f32 to vector<1x128xf32>
    %39 = arith.addf %38, %37 : vector<1x128xf32>
    %cst_17 = arith.constant 1.000000e+00 : f32
    %40 = vector.broadcast %cst_17 : f32 to vector<1x128xf32>
    %41 = arith.divf %40, %39 : vector<1x128xf32>
    %42 = arith.cmpf olt, %4, %41 : vector<1x128xf32>
    %43 = arith.extui %42 : vector<1x128xi1> to vector<1x128xi32>
    %44 = arith.sitofp %43 : vector<1x128xi32> to vector<1x128xf32>
    %c0_18 = arith.constant 0 : index
    %c0_19 = arith.constant 0 : index
    %45 = vector.load %arg3[%c0_18, %c0_19] : memref<8x128xf32, #tpu.memory_space<vmem>>, vector<1x128xf32>
    tpu.vector_store %arg3[%c0_18, %c0_19], %33 {strides = array<i32>} : memref<8x128xf32, #tpu.memory_space<vmem>>, vector<1x128xf32>,
    %c1 = arith.constant 1 : index
    %c0_20 = arith.constant 0 : index
    %46 = vector.load %arg3[%c1, %c0_20] : memref<8x128xf32, #tpu.memory_space<vmem>>, vector<1x128xf32>
    tpu.vector_store %arg3[%c1, %c0_20], %41 {strides = array<i32>} : memref<8x128xf32, #tpu.memory_space<vmem>>, vector<1x128xf32>,
    %c2 = arith.constant 2 : index
    %c0_21 = arith.constant 0 : index
    %47 = vector.load %arg3[%c2, %c0_21] : memref<8x128xf32, #tpu.memory_space<vmem>>, vector<1x128xf32>
    tpu.vector_store %arg3[%c2, %c0_21], %44 {strides = array<i32>} : memref<8x128xf32, #tpu.memory_space<vmem>>, vector<1x128xf32>,
    %cst_22 = arith.constant 0.000000e+00 : f32
    %48 = vector.broadcast %cst_22 : f32 to vector<5x128xf32>
    %c3 = arith.constant 3 : index
    %c0_23 = arith.constant 0 : index
    %49 = vector.load %arg3[%c3, %c0_23] : memref<8x128xf32, #tpu.memory_space<vmem>>, vector<5x128xf32>
    tpu.vector_store %arg3[%c3, %c0_23], %48 {strides = array<i32>} : memref<8x128xf32, #tpu.memory_space<vmem>>, vector<5x128xf32>,
    return
  }
  func.func @transform_0(%arg0: i32) -> (i32, i32) {
    %c0_i32 = arith.constant 0 : i32
    %c0_i32_0 = arith.constant 0 : i32
    return %c0_i32, %arg0 : i32, i32
  }
  func.func @transform_1(%arg0: i32) -> (i32, i32) {
    %c0_i32 = arith.constant 0 : i32
    %c0_i32_0 = arith.constant 0 : i32
    %c0_i32_1 = arith.constant 0 : i32
    return %c0_i32, %c0_i32_0 : i32, i32
  }
  func.func @transform_2(%arg0: i32) -> (i32, i32) {
    %c0_i32 = arith.constant 0 : i32
    %c0_i32_0 = arith.constant 0 : i32
    return %c0_i32, %arg0 : i32, i32
  }
}

</mosaic_0001>

<bundles_post_ra>
// kernel: tpu_custom_call.1
= control target key start
LH: loop header
LB: loop body
LE: loop exit
PB: predicated region body
PF: predicated region fallthrough
CT: control target
= control target key end

     0   :  { %s708_s13 = smov 124   ;;  %s823_s0 = inlined_call_operand.vmem [shape: f32[16,128], index: 0, kind: input, shape index: {}]   ;;  %s824_s1 = inlined_call_operand.vmem [shape: f32[80,48], index: 1, kind: input, shape index: {}]   ;;  %s825_s2 = inlined_call_operand.hbm [shape: f32[8,128], index: 2, kind: output, shape index: {}]  }
   0x1   :  { %v734_v0 = vld [vmem:[%s824_s1] sm:$0xff]  ;;  %v739_v1 = vld [vmem:[%s824_s1 + $0x10] sm:$0xff]  ;;  %v24_v2 = vld [vmem:[%s824_s1 + $0x8] sm:$0xff] }
   0x2   :  { %35 = vrot.lane.b32.xlu0 %v734_v0, %s708_s13  ;;  %39 = vrot.lane.b32.xlu1 %v739_v1, %s708_s13  ;;  %v26_v3 = vld [vmem:[%s824_s1 + $0x18] sm:$0xff]  ;;  %v752_v4 = vld [vmem:[%s823_s0 + $0x8] sm:$0xff] }
   0x3   :  { %v18_v5 = vadd.f32 1e-08, %v752_v4 }
   0x4   :  { %7 = vsyncpa [#allocation3], 0  ;;  %v12_v6 = vld [vmem:[%s823_s0] sm:$0xff]  ;;  %v28_v8 = vld [vmem:[%s824_s1 + $0x28] sm:$0xff]  ;;  %v709_v11 = vmov 8   ;;  %vm60_vm0 = vcmask 1043456  }
   0x5   :  { %660 = vrcp.f32 %v18_v5  ;;  %v27_v7 = vld [vmem:[%s824_s1 + $0x20] sm:$0xff]  ;;  %v15_v9 = vrot.slane %v12_v6, 4  ;;  %655 = vset.pattern.permute.xlu1 %v709_v11  ;;  %654 = vset.pattern.permute.xlu0 %v709_v11  ;;  %vm47_vm1 = vcmask 31744   ;;  %v710_v21 = vmov 0.0|0.0   ;;  %v304_v51 = vld [vmem:[%s824_s1 + $0x30] sm:$0xff]  ;;  %v305_v52 = vld [vmem:[%s824_s1 + $0x38] sm:$0xff] }
   0x6   :  { %37 = vrot.lane.b32.xlu0 %v24_v2, %s708_s13  ;;  %41 = vrot.lane.b32.xlu1 %v26_v3, %s708_s13  ;;  %vm711_vm2 = vmmov 0   ;;  %v712_v22 = vmov 0.0   ;;  %v713_v23 = vmov 9   ;;  %vm325_vm3 = vcmask 392192   ;;  %v306_v53 = vld [vmem:[%s824_s1 + $0x40] sm:$0xff]  ;;  %s715_s5 = smov [#allocation2]  }
   0x7   :  { %v17_v10 = vsub.f32 %v12_v6, %v15_v9  ;;  %628 = vmatprep.subr.bf16.mxu1 %v710_v21  ;;  %610 = vmatprep.mubr.msk.f32.mxu1 %vm711_vm2, %v712_v22  ;;  %514 = vst [vmem:[#allocation2 + $0x3] sm:$0x1f] %v712_v22  ;;  %v714_v54 = vmov 10   ;;  %vm425_vm4 = vcmask 195584   ;;  %s521_s6 = sshll.u32 %s715_s5, 4  ;;  %s522_s6 = int_to_ptr.vmem [resolvable:$true] %s521_s6 }
   0x8   :  { %p689_p1 = scmp.lt.s32.totalorder %s522_s6, %s522_s6 }
   0xa   :  { %43 = vrot.lane.b32.xlu0 %v27_v7, %s708_s13  ;;  %45 = vrot.lane.b32.xlu1 %v28_v8, %s708_s13 }
   0xe   :  { %273 = vperm.xlu1 %655, %v24_v2   ;;  %269 = vperm.xlu0 %654, %v734_v0  }
   0xf   :  { %v661_v12 = vpop.eup %660 }
  0x10   :  { %v20_v13 = vmul.f32 %v661_v12, %v17_v10 }
  0x12   :  { %v529_v14 = vclamps-f32 %v20_v13, 5.0  ;;  %277 = vperm.xlu1 %655, %v739_v1   ;;  %281 = vperm.xlu0 %654, %v26_v3  }
  0x14   :  { %576 = vmatprep.subr.msk.mxu0 %vm60_vm0, %v529_v14 }
  0x15   :  { %577 = vmatpush3.msk.msra.mxu0 %vm60_vm0, %v529_v14 }
  0x16   :  { %587 = vmatprep.subr.msk.mxu0 %vm60_vm0, %v12_v6  ;;  %285 = vperm.xlu1 %655, %v27_v7  }
  0x17   :  { %289 = vperm.xlu0 %654, %v28_v8  }
  0x1a   :  { %656 = vset.pattern.permute.xlu1 %v713_v23 }
  0x1b   :  { %657 = vset.pattern.permute.xlu0 %v713_v23  ;;  %312 = vperm.xlu1 %656, %v734_v0  }
  0x1c   :  { %317 = vperm.xlu0 %657, %v24_v2  }
  0x1f   :  { %322 = vperm.xlu1 %656, %v739_v1  }
  0x20   :  { %659 = vset.pattern.permute.xlu0 %v714_v54 }
  0x23   :  { %658 = vset.pattern.permute.xlu1 %v714_v54 }
  0x24   :  { %422 = vperm.xlu1 %658, %v734_v0  }
  0x74   :  { %v36_v15 = vpop.permute.xlu0 %35  ;;  %v40_v16 = vpop.permute.xlu1 %39 }
  0x75   :  { %578 = vmatprep.mubr.msk.f32.mxu0 %vm47_vm1, %v36_v15 }
  0x78   :  { %v38_v17 = vpop.permute.xlu0 %37  ;;  %v42_v18 = vpop.permute.xlu1 %41 }
  0x79   :  { %579 = vmatmul.mubr.msk.f32.vlgmr.msra.gmra.mrb[0].mxu0 %vm47_vm1, %v38_v17 }
  0x7a   :  { %581 = vmatprep.mubr.msk.f32.mxu0 %vm47_vm1, %v40_v16  ;;  %588 = vmatpush3.msk.msra.mxu0 %vm60_vm0, %v12_v6 }
  0x7c   :  { %v44_v19 = vpop.permute.xlu0 %43  ;;  %v46_v20 = vpop.permute.xlu1 %45 }
  0x7d   :  { %582 = vmatmul.mubr.msk.f32.gmra.mrb[2].mxu0 %vm47_vm1, %v42_v18 }
  0x7e   :  { %584 = vmatprep.mubr.msk.f32.mxu0 %vm47_vm1, %v44_v19 }
  0x81   :  { %585 = vmatmul.mubr.msk.f32.gmra.mrb[4].mxu0 %vm47_vm1, %v46_v20 }
  0x82   :  { %589 = vmatprep.mubr.msk.f32.mxu0 %vm47_vm1, %v734_v0  ;;  %v418_v0 = vld [vmem:[%s824_s1 + $0x48] sm:$0xff]  ;;  %s684_s1 = scalar_lea.vmem %s522_s6, 128 }
  0x83   :  { %p685_p0 = scmp.ne.s32.totalorder %s522_s6, %s684_s1  ;;  %p690_p2 = scmp.lt.s32.totalorder %s684_s1, %s684_s1 }
  0x85   :  { %590 = vmatmul.mubr.msk.f32.vlgmr.msra.gmra.mrb[0].mxu0 %vm47_vm1, %v24_v2  ;;  %p691_p3 = por %p690_p2, %p689_p1 }
  0x86   :  { %592 = vmatprep.mubr.msk.f32.mxu0 %vm47_vm1, %v739_v1 }
  0x87   :  { %p692_p4 = pnand %p691_p3, %p685_p0 }
  0x89   :  { %593 = vmatmul.mubr.msk.f32.gmra.mrb[2].mxu0 %vm47_vm1, %v26_v3 }
  0x8a   :  { %595 = vmatprep.mubr.msk.f32.mxu0 %vm47_vm1, %v27_v7 }
  0x8d   :  { %596 = vmatmul.mubr.msk.f32.gmra.mrb[4].mxu0 %vm47_vm1, %v28_v8  ;;  %v270_v24 = vpop.permute.xlu0 %269  ;;  %v274_v25 = vpop.permute.xlu1 %273 }
  0x91   :  { %v282_v29 = vpop.permute.xlu0 %281  ;;  %v278_v31 = vpop.permute.xlu1 %277 }
  0x95   :  { %v286_v38 = vpop.permute.xlu1 %285 }
  0x96   :  { %v290_v36 = vpop.permute.xlu0 %289 }
  0x9a   :  { %v313_v55 = vpop.permute.xlu1 %312 }
  0x9b   :  { %v318_v59 = vpop.permute.xlu0 %317 }
  0x9e   :  { %v323_v63 = vpop.permute.xlu1 %322 }
  0xa3   :  { %v423_v9 = vpop.permute.xlu1 %422 }
 0x158   :  { %v591_v26 = vpop.f32.mrb[0].mxu0 }
 0x159   :  { %v293_v27 = vadd.f32 %v591_v26, %v274_v25  ;;  %v239_v28 = vpop.f32.mrb[1].mxu0 }
 0x15a   :  { %v292_v30 = vadd.f32 %v270_v24, %v239_v28 }
 0x15b   :  { %662 = vtanh.f32 %v293_v27 }
 0x15c   :  { %664 = vtanh.f32 %v292_v30  ;;  %v594_v32 = vpop.f32.mrb[2].mxu0 }
 0x15d   :  { %v295_v33 = vadd.f32 %v594_v32, %v282_v29  ;;  %v249_v34 = vpop.f32.mrb[3].mxu0 }
 0x15e   :  { %v294_v35 = vadd.f32 %v278_v31, %v249_v34 }
 0x15f   :  { %666 = vtanh.f32 %v295_v33 }
 0x160   :  { %668 = vtanh.f32 %v294_v35  ;;  %v597_v37 = vpop.f32.mrb[4].mxu0 }
 0x161   :  { %v297_v39 = vadd.f32 %v597_v37, %v290_v36  ;;  %v259_v40 = vpop.f32.mrb[5].mxu0 }
 0x162   :  { %v296_v41 = vadd.f32 %v286_v38, %v259_v40 }
 0x163   :  { %670 = vtanh.f32 %v297_v39 }
 0x164   :  { %672 = vtanh.f32 %v296_v41 }
 0x165   :  { %v663_v42 = vpop.eup %662 }
 0x166   :  { %v665_v43 = vpop.eup %664 }
 0x167   :  { %v629_v44 = vpack.c.bf16 %v663_v42, %v665_v43 }
 0x169   :  { %v667_v45 = vpop.eup %666  ;;  %630 = vmatpush3.bf16.msra.mxu1 %v629_v44 }
 0x16a   :  { %v669_v46 = vpop.eup %668  ;;  %631 = vmatprep.subr.bf16.mxu1 %v710_v21 }
 0x16b   :  { %v632_v47 = vpack.c.bf16 %v667_v45, %v669_v46 }
 0x16d   :  { %v671_v48 = vpop.eup %670  ;;  %633 = vmatpush3.bf16.msra.mxu1 %v632_v47 }
 0x16e   :  { %v673_v49 = vpop.eup %672  ;;  %634 = vmatprep.subr.bf16.mxu1 %v710_v21 }
 0x16f   :  { %v635_v50 = vpack.c.bf16 %v671_v48, %v673_v49 }
 0x171   :  { %636 = vmatpush3.bf16.msra.mxu1 %v635_v50 }
 0x172   :  { %637 = vmatprep.subr.bf16.mxu1 %v710_v21 }
 0x174   :  { %611 = vmatmul.mubr.msk.f32.vlgmr.msra.gmra.mrb[0].mxu1 %vm325_vm3, %v304_v51 }
 0x175   :  { %613 = vmatprep.mubr.msk.f32.mxu1 %vm711_vm2, %v712_v22 }
 0x178   :  { %614 = vmatmul.mubr.msk.f32.gmra.mrb[2].mxu1 %vm325_vm3, %v305_v52 }
 0x179   :  { %616 = vmatprep.mubr.msk.f32.mxu1 %vm711_vm2, %v712_v22 }
 0x17c   :  { %617 = vmatmul.mubr.msk.f32.gmra.mrb[4].mxu1 %vm325_vm3, %v306_v53 }
 0x17d   :  { %625 = vmatprep.mubr.msk.f32.mxu1 %vm711_vm2, %v712_v22 }
 0x247   :  { %v401_v56 = vpop.f32.mrb[0].mxu1 }
 0x248   :  { %v612_v57 = vpop.f32.mrb[1].mxu1  ;;  %v402_v58 = vadd.f32 %v401_v56, %v313_v55 }
 0x24a   :  { %674 = vtanh.f32 %v402_v58 }
 0x24b   :  { %v406_v60 = vpop.f32.mrb[2].mxu1 }
 0x24c   :  { %v407_v61 = vadd.f32 %v406_v60, %v318_v59  ;;  %v615_v62 = vpop.f32.mrb[3].mxu1 }
 0x24e   :  { %676 = vtanh.f32 %v407_v61 }
 0x24f   :  { %v411_v1 = vpop.f32.mrb[4].mxu1 }
 0x250   :  { %v412_v2 = vadd.f32 %v411_v1, %v323_v63  ;;  %v618_v3 = vpop.f32.mrb[5].mxu1 }
 0x252   :  { %678 = vtanh.f32 %v412_v2 }
 0x254   :  { %v675_v5 = vpop.eup %674 }
 0x258   :  { %v677_v6 = vpop.eup %676 }
 0x259   :  { %v638_v7 = vpack.c.bf16 %v677_v6, %v675_v5 }
 0x25b   :  { %639 = vmatpush3.bf16.msra.mxu1 %v638_v7 }
 0x25c   :  { %623 = vmatprep.subr.mxu1 %v712_v22  ;;  %v679_v8 = vpop.eup %678 }
 0x25f   :  { %624 = vmatpush3.msra.mxu1 %v679_v8 }
 0x260   :  { %626 = vmatmul.mubr.msk.f32.vlgmr.msra.gmra.mrb[6].mxu1 %vm425_vm4, %v418_v0 }
 0x333   :  { %v495_v10 = vpop.f32.mrb[6].mxu1 }
 0x334   :  { %v496_v11 = vadd.f32 %v495_v10, %v423_v9  ;;  %v627_v12 = vpop.f32.mrb[7].mxu1 }
 0x336   :  { %v499_v13 = vsub.f32 0.0, %v496_v11  ;;  %511 = vst [vmem:[#allocation2] sm:$0x1] %v496_v11 }
 0x338   :  { %v500_v14 = vmul.f32 1.442695, %v499_v13 }
 0x33a   :  { %680 = vpow2.f32 %v500_v14 }
 0x344   :  { %v681_v15 = vpop.eup %680 }
 0x345   :  { %v502_v16 = vadd.f32 1.0, %v681_v15 }
 0x347   :  { %682 = vrcp.f32 %v502_v16 }
 0x351   :  { %v683_v17 = vpop.eup %682 }
 0x352   :  { %512 = vst [vmem:[#allocation2] sm:$0x2] %v683_v17  ;;  %v506_v18 = vrot.slane %v683_v17, 5 }
 0x354   :  { %vm508_vm5 = vcmp.lt.f32.partialorder %v752_v4, %v506_v18 }
 0x355   :  { %v548_v19 = vsel %vm508_vm5, 1.0, %v712_v22 }
 0x356   :  { %513 = vst [vmem:[#allocation2 - $0x2] sm:$0x10] %v548_v19 }
 0x357   :  { %695 = shalt.err (!%p692_p4)
}
 0x358   :  { %s696_s9 = scalar_lea.hbm %s825_s2, 128 }
 0x359   :  { %p697_p5 = scmp.ne.s32.totalorder %s825_s2, %s696_s9  ;;  %p700_p6 = scmp.lt.u32.totalorder %s696_s9, %s825_s2 }
 0x35b   :  { %p702_p7 = pnand %p700_p6, %p697_p5 }
 0x35d   :  { %705 = shalt.err (!%p702_p7)
}
 0x35e   :  { %524 = dma.vmem_to_hbm [thread:$0]  %s522_s6, 128, %s825_s2, [#allocation3]  }
 0x35f   :  { %706 = dma.done.wait [#allocation3], 128  }
 0x360   :  { %707 = vsyncadd [#allocation3], 4294967168 }
 0x361   :  { %528 = vsyncpa [#allocation3], 1 }

</bundles_post_ra>
